<compile_context>
chip_gen: v7x
topology: tpu7x:2x2x1
jax: 0.10.0
libtpu: 0.0.40
codegen_flags: <defaults>
</compile_context>

<pallas_src>
import functools
import math

import jax
import jax.numpy as jnp
from jax.experimental import pallas as pl
from jax.experimental.pallas import tpu as pltpu


def _round_up(x, m):
    return ((x + m - 1) // m) * m


# ---------------------------------------------------------------------------
# Fused kernel:
#   acc = bf16(x) @ W1_img  +  onehot(chs) @ W1_emb         (f32 accumulate)
#   h   = relu(acc + b1)                                      (f32 epilogue)
#   o   = bf16(h) @ W2_padded                                 (lane-dense out)
# ---------------------------------------------------------------------------
def _gate_mlp_kernel(x_ref, chs_ref, w1x_ref, w1e_ref, exp_ref, lane_ref,
                     b1_ref, w2_ref, o_ref):
    # Image part: cast f32 rows to bf16 in-kernel, main MXU matmul.
    xb = x_ref[...].astype(jnp.bfloat16)
    acc = jnp.dot(xb, w1x_ref[...], preferred_element_type=jnp.float32)

    # Channel part: expand (tm, n_sel) indices to (tm, n_sel*n_ch) with an
    # exact 0/1 matmul, compare against per-lane channel ids -> one-hot,
    # then one MXU matmul against the embedding-folded weights.
    chs_exp = jnp.dot(chs_ref[...].astype(jnp.bfloat16), exp_ref[...],
                      preferred_element_type=jnp.float32)
    onehot = (chs_exp == lane_ref[...]).astype(jnp.bfloat16)
    acc += jnp.dot(onehot, w1e_ref[...], preferred_element_type=jnp.float32)

    # Epilogue: bias + ReLU (f32).
    # TODO(synk): nn.Dropout(0.3) is identity in eval mode; training-mode dropout not implemented.
    h = jnp.maximum(acc + b1_ref[...], 0.0)

    # Tiny second matmul in bf16; output is zero-padded to 128 lanes.
    o_ref[...] = jnp.dot(h.astype(jnp.bfloat16), w2_ref[...],
                         preferred_element_type=jnp.float32)


def _choose_tile_m(M, max_tile_m):
    if M <= 8:
        return M
    # Keep >= 2 grid programs (multiple of 8) so both v7x TensorCores get work,
    # without giving up tile size for small/medium M.
    return min(max_tile_m, _round_up(pl.cdiv(M, 2), 8))


def fused_gate_mlp(x_flat, chs, weights, *, max_tile_m=512):
    """x_flat:(M,Kx) f32, chs:(M,n_sel) int32, weights prepared by prepare_params."""
    M, Kx = x_flat.shape
    _, n_sel = chs.shape
    Ke, Hp = weights["w1e"].shape
    _, Op = weights["w2"].shape

    tm = _choose_tile_m(M, max_tile_m)
    grid = (pl.cdiv(M, tm),)

    flops = 2 * M * (Kx * Hp + Ke * Hp + n_sel * Ke + Hp * Op)
    bytes_accessed = (M * Kx * 4 + M * n_sel * 4 + M * Op * 4
                      + 2 * (Kx * Hp + Ke * Hp + n_sel * Ke + Hp * Op) + 4 * Hp)

    return pl.pallas_call(
        _gate_mlp_kernel,
        out_shape=jax.ShapeDtypeStruct((M, Op), jnp.float32),
        grid_spec=pltpu.PrefetchScalarGridSpec(
            num_scalar_prefetch=0,
            grid=grid,
            in_specs=[
                pl.BlockSpec((tm, Kx), lambda i: (i, 0)),      # image rows (f32)
                pl.BlockSpec((tm, n_sel), lambda i: (i, 0)),   # channel indices (int32)
                pl.BlockSpec((Kx, Hp), lambda i: (0, 0)),      # W1 image part (VMEM-resident)
                pl.BlockSpec((Ke, Hp), lambda i: (0, 0)),      # W1 channel part (emb-folded)
                pl.BlockSpec((n_sel, Ke), lambda i: (0, 0)),   # 0/1 index-expansion matrix
                pl.BlockSpec((1, Ke), lambda i: (0, 0)),       # per-lane channel ids
                pl.BlockSpec((1, Hp), lambda i: (0, 0)),       # bias
                pl.BlockSpec((Hp, Op), lambda i: (0, 0)),      # W2 (O padded to 128)
            ],
            out_specs=pl.BlockSpec((tm, Op), lambda i: (i, 0)),
        ),
        compiler_params=pltpu.CompilerParams(
            dimension_semantics=("parallel",),
        ),
        cost_estimate=pl.CostEstimate(flops=flops, transcendentals=0,
                                      bytes_accessed=bytes_accessed),
    )(x_flat, chs, weights["w1x"], weights["w1e"], weights["exp"],
      weights["lane"], weights["b1"], weights["w2"])


# ---------------------------------------------------------------------------
# Deterministic parameter init (shapes from GateMLP_POS.__init__)
# ---------------------------------------------------------------------------
def init_params(key, i_size, width, height, o_size=1, n_ch=32, rate=0.5):
    input_size = i_size * width * height
    n_sel = int(n_ch * rate)
    lin1_in = input_size + n_ch * n_sel
    lin1_out = lin1_in // 32
    k_emb, k_w1, k_b1, k_w2 = jax.random.split(key, 4)

    def u(k, shape, fan_in):
        bound = 1.0 / math.sqrt(fan_in)
        return jax.random.uniform(k, shape, jnp.float32, -bound, bound)

    return {
        "emb": jax.random.normal(k_emb, (n_ch, n_ch), jnp.float32),  # nn.Embedding ~ N(0,1)
        "wl1": u(k_w1, (lin1_out, lin1_in), lin1_in),                # nn.Linear weight (out,in)
        "bl1": u(k_b1, (lin1_out,), lin1_in),
        "wl2": u(k_w2, (o_size, lin1_out), lin1_out),                # bias=False
    }


# ---------------------------------------------------------------------------
# One-time weight prep: fold embedding into W1, split image / channel parts,
# pad hidden to 128 and output to 128 (lane-dense), build one-hot constants.
# ---------------------------------------------------------------------------
def prepare_params(params, *, i_size, width, height, n_ch=32, rate=0.5):
    input_size = i_size * width * height
    n_sel = int(n_ch * rate)
    Ke = n_sel * n_ch
    H = params["wl1"].shape[0]       # hidden = lin1_in // 32
    O = params["wl2"].shape[0]

    w1_t = params["wl1"].T.astype(jnp.float32)            # (lin1_in, H)
    w1_x = w1_t[:input_size]                               # image part
    w1_e = w1_t[input_size:].reshape(n_sel, n_ch, H)       # embedding part
    # onehot(chs).flatten() @ w1_eff  ==  flatten(E[chs]) @ w1_e
    w1_eff = jnp.einsum("nd,jdh->jnh", params["emb"], w1_e).reshape(Ke, H)

    Hp = _round_up(H, 128)
    Op = _round_up(O, 128)

    w1x = jnp.zeros((input_size, Hp), jnp.float32).at[:, :H].set(w1_x)
    w1e = jnp.zeros((Ke, Hp), jnp.float32).at[:, :H].set(w1_eff)
    b1 = jnp.zeros((1, Hp), jnp.float32).at[0, :H].set(params["bl1"])
    w2 = jnp.zeros((Hp, Op), jnp.float32).at[:H, :O].set(params["wl2"].T)

    # exp[j, l] = 1 iff l // n_ch == j   (replicates index j over its 32 lanes)
    j_idx = jnp.arange(n_sel)[:, None]
    l_idx = jnp.arange(Ke)[None, :]
    exp_mat = (l_idx // n_ch == j_idx).astype(jnp.float32)
    lane = (l_idx % n_ch).astype(jnp.float32)              # (1, Ke) channel id per lane

    weights = {
        "w1x": w1x.astype(jnp.bfloat16),   # bf16 MXU operands
        "w1e": w1e.astype(jnp.bfloat16),
        "exp": exp_mat.astype(jnp.bfloat16),
        "lane": lane,                      # f32 compare constant
        "b1": b1,                          # f32 epilogue
        "w2": w2.astype(jnp.bfloat16),     # bf16 tiny second matmul
    }
    cfg = {"input_size": input_size, "o_size": O}
    return weights, cfg


# ---------------------------------------------------------------------------
# Forward pass (no HBM materialization of concat / one-hot / bf16 cast)
# ---------------------------------------------------------------------------
def gate_mlp_pos_forward(weights, x, chs, *, input_size, o_size):
    """x: (B, i_size, H, W) float32; chs: (B, n_sel) int32 in [0, n_ch)."""
    B = x.shape[0]
    x_flat = x.reshape(B, input_size)                  # contiguous view, stays f32
    out = fused_gate_mlp(x_flat, chs.astype(jnp.int32), weights)
    return out[:, :o_size]                             # drop lane-padding columns


# ---------------------------------------------------------------------------
# Pure-JAX reference (f32) for a sanity check
# ---------------------------------------------------------------------------
def reference_forward(params, x, chs):
    B = x.shape[0]
    x_flat = x.reshape(B, -1)
    emb = params["emb"][chs].reshape(B, -1)
    h = jnp.concatenate([x_flat, emb], axis=-1)
    h = jnp.maximum(h @ params["wl1"].T + params["bl1"], 0.0)
    return h @ params["wl2"].T


if __name__ == "__main__":
    key = jax.random.PRNGKey(0)
    k_x, k_chs, k_p = jax.random.split(key, 3)

    i_size, width, height, o_size = 4, 16, 16, 1
    n_ch, rate = 32, 0.5
    n_sel = int(n_ch * rate)
    batch = 2

    x = jax.random.normal(k_x, (batch, i_size, height, width), jnp.float32)
    chs = jax.random.randint(k_chs, (batch, n_sel), 0, n_ch, dtype=jnp.int32)

    params = init_params(k_p, i_size, width, height, o_size, n_ch, rate)
    weights, cfg = prepare_params(params, i_size=i_size, width=width, height=height,
                                  n_ch=n_ch, rate=rate)

    fwd = jax.jit(functools.partial(gate_mlp_pos_forward, **cfg))
    out = jax.block_until_ready(fwd(weights, x, chs))

    ref = reference_forward(params, x, chs)

    assert out.shape == (batch, o_size)
    assert bool(jnp.all(jnp.isfinite(out)))
    assert bool(jnp.allclose(out, ref, atol=5e-2, rtol=5e-2))  # bf16-matmul tolerance
    print("KERNEL_OK")
</pallas_src>

<mosaic_0001>
module attributes {stable_mosaic.version = 11 : i64} {
  func.func @_gate_mlp_kernel(%arg0: i32, %arg1: memref<2x1024xf32, #tpu.memory_space<vmem>>, %arg2: memref<2x16xi32, #tpu.memory_space<vmem>>, %arg3: memref<1024x128xbf16, #tpu.memory_space<vmem>>, %arg4: memref<512x128xbf16, #tpu.memory_space<vmem>>, %arg5: memref<16x512xbf16, #tpu.memory_space<vmem>>, %arg6: memref<1x512xf32, #tpu.memory_space<vmem>>, %arg7: memref<1x128xf32, #tpu.memory_space<vmem>>, %arg8: memref<128x128xbf16, #tpu.memory_space<vmem>>, %arg9: memref<2x128xf32, #tpu.memory_space<vmem>>) attributes {dimension_semantics = [#tpu.dimension_semantics<parallel>], iteration_bounds = array<i64: 1>, scalar_prefetch = 0 : i64, scratch_operands = 0 : i64, tpu.core_type = #tpu.core_type<tc>, window_params = [{transform_indices = @transform_0, window_bounds = array<i64: 2, 1024>}, {transform_indices = @transform_1, window_bounds = array<i64: 2, 16>}, {pipeline_mode = #tpu.pipeline_mode<synchronous>, transform_indices = @transform_2, window_bounds = array<i64: 1024, 128>}, {pipeline_mode = #tpu.pipeline_mode<synchronous>, transform_indices = @transform_3, window_bounds = array<i64: 512, 128>}, {pipeline_mode = #tpu.pipeline_mode<synchronous>, transform_indices = @transform_4, window_bounds = array<i64: 16, 512>}, {pipeline_mode = #tpu.pipeline_mode<synchronous>, transform_indices = @transform_5, window_bounds = array<i64: 1, 512>}, {pipeline_mode = #tpu.pipeline_mode<synchronous>, transform_indices = @transform_6, window_bounds = array<i64: 1, 128>}, {pipeline_mode = #tpu.pipeline_mode<synchronous>, transform_indices = @transform_7, window_bounds = array<i64: 128, 128>}, {transform_indices = @transform_8, window_bounds = array<i64: 2, 128>}]} {
    %c0 = arith.constant 0 : index
    %c0_0 = arith.constant 0 : index
    %0 = vector.load %arg1[%c0, %c0_0] : memref<2x1024xf32, #tpu.memory_space<vmem>>, vector<2x1024xf32>
    %1 = arith.truncf %0 : vector<2x1024xf32> to vector<2x1024xbf16>
    %c0_1 = arith.constant 0 : index
    %c0_2 = arith.constant 0 : index
    %2 = vector.load %arg3[%c0_1, %c0_2] : memref<1024x128xbf16, #tpu.memory_space<vmem>>, vector<1024x128xbf16>
    %cst = arith.constant dense<0.000000e+00> : vector<2x128xf32>
    %3 = tpu.matmul %1, %2, %cst {dimension_numbers = #tpu.dot_dimension_numbers<[1], [0], [0], [1], [0, 0, 1, 1], [], []>} : vector<2x1024xbf16>, vector<1024x128xbf16>, vector<2x128xf32> -> vector<2x128xf32>
    %c0_3 = arith.constant 0 : index
    %c0_4 = arith.constant 0 : index
    %4 = vector.load %arg2[%c0_3, %c0_4] : memref<2x16xi32, #tpu.memory_space<vmem>>, vector<2x16xi32>
    %5 = arith.sitofp %4 : vector<2x16xi32> to vector<2x16xbf16>
    %c0_5 = arith.constant 0 : index
    %c0_6 = arith.constant 0 : index
    %6 = vector.load %arg5[%c0_5, %c0_6] : memref<16x512xbf16, #tpu.memory_space<vmem>>, vector<16x512xbf16>
    %cst_7 = arith.constant dense<0.000000e+00> : vector<2x512xf32>
    %7 = tpu.matmul %5, %6, %cst_7 {dimension_numbers = #tpu.dot_dimension_numbers<[1], [0], [0], [1], [0, 0, 1, 1], [], []>} : vector<2x16xbf16>, vector<16x512xbf16>, vector<2x512xf32> -> vector<2x512xf32>
    %c0_8 = arith.constant 0 : index
    %c0_9 = arith.constant 0 : index
    %8 = vector.load %arg6[%c0_8, %c0_9] : memref<1x512xf32, #tpu.memory_space<vmem>>, vector<1x512xf32>
    %9 = vector.broadcast %8 : vector<1x512xf32> to vector<2x512xf32>
    %10 = arith.cmpf oeq, %7, %9 : vector<2x512xf32>
    %11 = arith.extui %10 : vector<2x512xi1> to vector<2x512xi32>
    %12 = arith.sitofp %11 : vector<2x512xi32> to vector<2x512xf32>
    %13 = arith.truncf %12 : vector<2x512xf32> to vector<2x512xbf16>
    %c0_10 = arith.constant 0 : index
    %c0_11 = arith.constant 0 : index
    %14 = vector.load %arg4[%c0_10, %c0_11] : memref<512x128xbf16, #tpu.memory_space<vmem>>, vector<512x128xbf16>
    %cst_12 = arith.constant dense<0.000000e+00> : vector<2x128xf32>
    %15 = tpu.matmul %13, %14, %cst_12 {dimension_numbers = #tpu.dot_dimension_numbers<[1], [0], [0], [1], [0, 0, 1, 1], [], []>} : vector<2x512xbf16>, vector<512x128xbf16>, vector<2x128xf32> -> vector<2x128xf32>
    %16 = arith.addf %3, %15 : vector<2x128xf32>
    %c0_13 = arith.constant 0 : index
    %c0_14 = arith.constant 0 : index
    %17 = vector.load %arg7[%c0_13, %c0_14] : memref<1x128xf32, #tpu.memory_space<vmem>>, vector<1x128xf32>
    %18 = vector.broadcast %17 : vector<1x128xf32> to vector<2x128xf32>
    %19 = arith.addf %16, %18 : vector<2x128xf32>
    %cst_15 = arith.constant 0.000000e+00 : f32
    %20 = vector.broadcast %cst_15 : f32 to vector<2x128xf32>
    %21 = arith.maximumf %19, %20 : vector<2x128xf32>
    %22 = arith.truncf %21 : vector<2x128xf32> to vector<2x128xbf16>
    %c0_16 = arith.constant 0 : index
    %c0_17 = arith.constant 0 : index
    %23 = vector.load %arg8[%c0_16, %c0_17] : memref<128x128xbf16, #tpu.memory_space<vmem>>, vector<128x128xbf16>
    %cst_18 = arith.constant dense<0.000000e+00> : vector<2x128xf32>
    %24 = tpu.matmul %22, %23, %cst_18 {dimension_numbers = #tpu.dot_dimension_numbers<[1], [0], [0], [1], [0, 0, 1, 1], [], []>} : vector<2x128xbf16>, vector<128x128xbf16>, vector<2x128xf32> -> vector<2x128xf32>
    %c0_19 = arith.constant 0 : index
    %c0_20 = arith.constant 0 : index
    %25 = vector.load %arg9[%c0_19, %c0_20] : memref<2x128xf32, #tpu.memory_space<vmem>>, vector<2x128xf32>
    tpu.vector_store %arg9[%c0_19, %c0_20], %24 {strides = array<i32>} : memref<2x128xf32, #tpu.memory_space<vmem>>, vector<2x128xf32>,
    return
  }
  func.func @transform_0(%arg0: i32) -> (i32, i32) {
    %c0_i32 = arith.constant 0 : i32
    %c0_i32_0 = arith.constant 0 : i32
    return %arg0, %c0_i32 : i32, i32
  }
  func.func @transform_1(%arg0: i32) -> (i32, i32) {
    %c0_i32 = arith.constant 0 : i32
    %c0_i32_0 = arith.constant 0 : i32
    return %arg0, %c0_i32 : i32, i32
  }
  func.func @transform_2(%arg0: i32) -> (i32, i32) {
    %c0_i32 = arith.constant 0 : i32
    %c0_i32_0 = arith.constant 0 : i32
    %c0_i32_1 = arith.constant 0 : i32
    return %c0_i32, %c0_i32_0 : i32, i32
  }
  func.func @transform_3(%arg0: i32) -> (i32, i32) {
    %c0_i32 = arith.constant 0 : i32
    %c0_i32_0 = arith.constant 0 : i32
    %c0_i32_1 = arith.constant 0 : i32
    return %c0_i32, %c0_i32_0 : i32, i32
  }
  func.func @transform_4(%arg0: i32) -> (i32, i32) {
    %c0_i32 = arith.constant 0 : i32
    %c0_i32_0 = arith.constant 0 : i32
    %c0_i32_1 = arith.constant 0 : i32
    return %c0_i32, %c0_i32_0 : i32, i32
  }
  func.func @transform_5(%arg0: i32) -> (i32, i32) {
    %c0_i32 = arith.constant 0 : i32
    %c0_i32_0 = arith.constant 0 : i32
    %c0_i32_1 = arith.constant 0 : i32
    return %c0_i32, %c0_i32_0 : i32, i32
  }
  func.func @transform_6(%arg0: i32) -> (i32, i32) {
    %c0_i32 = arith.constant 0 : i32
    %c0_i32_0 = arith.constant 0 : i32
    %c0_i32_1 = arith.constant 0 : i32
    return %c0_i32, %c0_i32_0 : i32, i32
  }
  func.func @transform_7(%arg0: i32) -> (i32, i32) {
    %c0_i32 = arith.constant 0 : i32
    %c0_i32_0 = arith.constant 0 : i32
    %c0_i32_1 = arith.constant 0 : i32
    return %c0_i32, %c0_i32_0 : i32, i32
  }
  func.func @transform_8(%arg0: i32) -> (i32, i32) {
    %c0_i32 = arith.constant 0 : i32
    %c0_i32_0 = arith.constant 0 : i32
    return %arg0, %c0_i32 : i32, i32
  }
}

</mosaic_0001>

<bundles_post_ra>
// kernel: gate_mlp_pos_forward.1
= control target key start
LH: loop header
LB: loop body
LE: loop exit
PB: predicated region body
PF: predicated region fallthrough
CT: control target
= control target key end

     0   :  { %13 = vsyncpa [#allocation3], 0  ;;  %s2009_s0 = inlined_call_operand.vmem [shape: f32[2,1024], index: 0, kind: input, shape index: {}]   ;;  %s2010_s1 = inlined_call_operand.vmem [shape: s32[2,16], index: 1, kind: input, shape index: {}]   ;;  %s2011_s2 = inlined_call_operand.hbm [shape: bf16[1024,128], index: 2, kind: input, shape index: {}]   ;;  %s2012_s3 = inlined_call_operand.hbm [shape: bf16[512,128], index: 3, kind: input, shape index: {}]   ;;  %s2013_s4 = inlined_call_operand.vmem [shape: bf16[16,512], index: 4, kind: input, shape index: {}]   ;;  %s2014_s5 = inlined_call_operand.vmem [shape: f32[1,512], index: 5, kind: input, shape index: {}]   ;;  %s2015_s6 = inlined_call_operand.vmem [shape: f32[1,128], index: 6, kind: input, shape index: {}]   ;;  %s2016_s7 = inlined_call_operand.vmem [shape: bf16[128,128], index: 7, kind: input, shape index: {}]   ;;  %s2017_s8 = inlined_call_operand.vmem [shape: f32[2,128], index: 8, kind: output, shape index: {}]  }
   0x1   :  { %14 = vsyncpa [#allocation5], 0  ;;  %s1845_s27 = smov [#allocation2]   ;;  %s1797_s9 = scalar_lea.hbm %s2011_s2, 8192 }
   0x2   :  { %s24_s28 = sshll.u32 %s1845_s27, 4  ;;  %p1798_p0 = scmp.ne.s32.totalorder %s2011_s2, %s1797_s9  ;;  %s25_s28 = int_to_ptr.vmem [resolvable:$true] %s24_s28 }
   0x3   :  { %p1801_p1 = scmp.lt.u32.totalorder %s1797_s9, %s2011_s2 }
   0x5   :  { %p1803_p2 = pnand %p1801_p1, %p1798_p0 }
   0x7   :  { %1806 = shalt.err (!%p1803_p2)
}
   0x8   :  { %s1807_s14 = scalar_lea.vmem %s25_s28, 8192  ;;  %p1812_p4 = scmp.lt.s32.totalorder %s25_s28, %s25_s28 }
   0x9   :  { %p1808_p3 = scmp.ne.s32.totalorder %s25_s28, %s1807_s14  ;;  %p1813_p5 = scmp.lt.s32.totalorder %s1807_s14, %s1807_s14 }
   0xb   :  { %p1814_p6 = por %p1813_p5, %p1812_p4 }
   0xd   :  { %p1815_p7 = pnand %p1814_p6, %p1808_p3 }
   0xf   :  { %1818 = shalt.err (!%p1815_p7)
}
  0x10   :  { %s1846_s15 = smov 64   ;;  %s1847_s16 = smov 4  }
  0x11   :  { %30 = dma.hbm_to_vmem [thread:$0]  %s2011_s2, 8192, %s25_s28, [#allocation3], %s1846_s15, %s1846_s15, %s1847_s16  }
  0x12   :  { %s1848_s19 = smov [#allocation4]   ;;  %s1819_s23 = scalar_lea.hbm %s2012_s3, 4096 }
  0x13   :  { %s36_s20 = sshll.u32 %s1848_s19, 4  ;;  %p1820_p8 = scmp.ne.s32.totalorder %s2012_s3, %s1819_s23  ;;  %s37_s20 = int_to_ptr.vmem [resolvable:$true] %s36_s20 }
  0x14   :  { %p1823_p9 = scmp.lt.u32.totalorder %s1819_s23, %s2012_s3 }
  0x16   :  { %p1825_p10 = pnand %p1823_p9, %p1820_p8 }
  0x18   :  { %1828 = shalt.err (!%p1825_p10)
}
  0x19   :  { %s1829_s29 = scalar_lea.vmem %s37_s20, 4096  ;;  %p1834_p12 = scmp.lt.s32.totalorder %s37_s20, %s37_s20 }
  0x1a   :  { %p1830_p11 = scmp.ne.s32.totalorder %s37_s20, %s1829_s29  ;;  %p1835_p13 = scmp.lt.s32.totalorder %s1829_s29, %s1829_s29 }
  0x1c   :  { %p1836_p0 = por %p1835_p13, %p1834_p12 }
  0x1e   :  { %p1837_p1 = pnand %p1836_p0, %p1830_p11 }
  0x20   :  { %1840 = shalt.err (!%p1837_p1)
}
  0x21   :  { %42 = dma.hbm_to_vmem [thread:$0]  %s2012_s3, 4096, %s37_s20, [#allocation5], %s1846_s15, %s1846_s15, %s1847_s16  }
  0x22   :  { %1841 = dma.done.wait [#allocation3], 8192  }
  0x23   :  { %1842 = vsyncadd [#allocation3], 4294959104 }
  0x24   :  { %1843 = dma.done.wait [#allocation5], 4096  }
  0x25   :  { %1844 = vsyncadd [#allocation5], 4294963200  ;;  %v1849_v0 = vmov 0   ;;  %v1685_v1 = vld [vmem:[%s2013_s4 + $0x4] ss:$16 sps:$4 sm:$0xff]   ;;  %vm267_vm0 = vcmask 130048   ;;  %v66_v44 = vlaneseq }
  0x26   :  { %303 = vmatprep.mubr.bf16.mxu1 %v1849_v0  ;;  %v1687_v2 = vld [vmem:[%s2013_s4] ss:$16 sps:$4 sm:$0xff]   ;;  %271 = vmatprep.subr.bf16.mxu1 %v1685_v1  ;;  %v1688_v5 = vld [vmem:[%s2013_s4 + $0x8] ss:$16 sps:$4 sm:$0xff]   ;;  %v1690_v6 = vld [vmem:[%s2013_s4 + $0xc] ss:$16 sps:$4 sm:$0xff]  }
  0x27   :  { %v240_v3 = vld [vmem:[%s2010_s1] sm:$0x3]  ;;  %272 = vmatpush1.bf16.msra.mxu1 %v1687_v2  ;;  %v1693_v10 = vld [vmem:[#allocation4 + $0x48] sm:$0xff]   ;;  %v1695_v12 = vld [vmem:[#allocation4 + $0x50] sm:$0xff]   ;;  %v1850_v42 = vmov 1983009808  }
  0x28   :  { %v241_v4 = vcvt.s32.f32 %v240_v3  ;;  %v1691_v7 = vld [vmem:[#allocation4 + $0x40] sm:$0xff]   ;;  %312 = vmatprep.subr.bf16.mxu1 %v1690_v6  ;;  %v1694_v11 = vld [vmem:[#allocation4 + $0x8] sm:$0xff]   ;;  %v1697_v14 = vld [vmem:[#allocation4 + $0x10] sm:$0xff]   ;;  %v64_v43 = vunpack.c.l.s4 %v1850_v42  ;;  %v67_v46 = vshrl.u32 %v66_v44, 7  ;;  %v1851_v2 = vmov 1.0|1.0  }
  0x29   :  { %v1692_v9 = vld [vmem:[#allocation4] sm:$0xff]   ;;  %1515 = vmatprep.subr.bf16.mxu0 %v1691_v7  ;;  %v1699_v16 = vld [vmem:[#allocation4 + $0x58] sm:$0xff]   ;;  %v1700_v17 = vld [vmem:[#allocation4 + $0xc8] sm:$0xff]   ;;  %vm1853_vm9 = vmmov 0  }
  0x2a   :  { %v242_v8 = vpack.c.bf16 %v241_v4, %v241_v4  ;;  %1516 = vmatpush3.bf16.msra.mxu0 %v1692_v9  ;;  %v1696_v13 = vld [vmem:[#allocation4 + $0xc0] sm:$0xff]   ;;  %v1701_v18 = vld [vmem:[#allocation4 + $0x18] sm:$0xff]   ;;  %v1702_v19 = vld [vmem:[#allocation4 + $0x88] sm:$0xff]   ;;  %v65_v45 = vunpack.c.0.s8 %v64_v43  ;;  %v357_v49 = vsub.s32 0, %v67_v46  ;;  %v361_v51 = vsub.s32 1, %v67_v46 }
  0x2b   :  { %1517 = vmatprep.subr.bf16.mxu0 %v1693_v10  ;;  %v1698_v15 = vld [vmem:[#allocation4 + $0x80] sm:$0xff]   ;;  %v1704_v21 = vld [vmem:[#allocation4 + $0xd0] sm:$0xff]   ;;  %v1707_v24 = vld [vmem:[#allocation4 + $0x68] sm:$0xff]   ;;  %v365_v59 = vsub.s32 2, %v67_v46  ;;  %v369_v62 = vsub.s32 3, %v67_v46 }
  0x2c   :  { %1396 = vmatmul.mubr.msk.bf16.vlgmr.msra.gmra.mrb[0].mxu1 %vm267_vm0, %v242_v8  ;;  %v1703_v20 = vld [vmem:[#allocation4 + $0x60] sm:$0xff]   ;;  %v1706_v23 = vld [vmem:[#allocation4 + $0x90] sm:$0xff]   ;;  %v1708_v25 = vld [vmem:[#allocation4 + $0xd8] sm:$0xff]   ;;  %v1940_v47 = vsub.s32 %v65_v45, %v67_v46 }
  0x2d   :  { %313 = vmatpush1.bf16.msra.mxu1 %v1688_v5  ;;  %344 = vmatprep.mubr.bf16.mxu1 %v1849_v0  ;;  %v1705_v22 = vld [vmem:[#allocation4 + $0x20] sm:$0xff]   ;;  %v1709_v26 = vld [vmem:[#allocation4 + $0x28] sm:$0xff]   ;;  %v1710_v27 = vld [vmem:[#allocation4 + $0x98] sm:$0xff]  }
  0x2e   :  { %1518 = vmatpush3.bf16.msra.mxu0 %v1694_v11  ;;  %1537 = vmatprep.subr.bf16.mxu1 %v1696_v13  ;;  %v1711_v28 = vld [vmem:[#allocation4 + $0x70] sm:$0xff]   ;;  %v1712_v29 = vld [vmem:[#allocation4 + $0xe0] sm:$0xff]   ;;  %v1715_v32 = vld [vmem:[#allocation4 + $0x78] sm:$0xff]  }
  0x2f   :  { %1519 = vmatprep.subr.bf16.mxu0 %v1695_v12  ;;  %v1713_v30 = vld [vmem:[#allocation4 + $0x30] sm:$0xff]   ;;  %v1714_v31 = vld [vmem:[#allocation4 + $0xa0] sm:$0xff]   ;;  %v1716_v33 = vld [vmem:[#allocation4 + $0xe8] sm:$0xff]  }
  0x30   :  { %v1717_v34 = vld [vmem:[#allocation4 + $0x38] sm:$0xff]   ;;  %v1718_v35 = vld [vmem:[#allocation4 + $0xa8] sm:$0xff]   ;;  %v1719_v36 = vld [vmem:[#allocation4 + $0xf0] sm:$0xff]  }
  0x31   :  { %v1720_v37 = vld [vmem:[#allocation2 + $0x40] sm:$0xff]   ;;  %v1721_v38 = vld [vmem:[#allocation4 + $0xb0] sm:$0xff]   ;;  %v1723_v39 = vld [vmem:[#allocation4 + $0xf8] sm:$0xff]  }
  0x32   :  { %1520 = vmatpush3.bf16.msra.mxu0 %v1697_v14  ;;  %v1725_v40 = vld [vmem:[#allocation4 + $0xb8] sm:$0xff]   ;;  %v1728_v41 = vld [vmem:[#allocation2 + $0xc0] sm:$0xff]   ;;  %v1724_v1 = vld [vmem:[#allocation2 + $0x48] sm:$0xff]  }
  0x33   :  { %1521 = vmatprep.subr.bf16.mxu0 %v1699_v16  ;;  %v58_v48 = vld [vmem:[%s2009_s0] sm:$0xff]  ;;  %v1726_v6 = vld [vmem:[#allocation2 + $0x8] sm:$0xff]   ;;  %v1727_v7 = vld [vmem:[#allocation2 + $0x50] sm:$0xff]  }
  0x34   :  { %1397 = vmatmul.mubr.msk.bf16.vlgmr.msra.gmra.mrb[4].mxu1 %vm267_vm0, %v242_v8  ;;  %v353_v50 = vld [vmem:[%s2014_s5] sm:$0xf]  ;;  %v1949_v52 = vrot.slane %v58_v48, %v1940_v47  ;;  %v62_v57 = vcombine.high %v58_v48, %v58_v48  ;;  %v1729_v12 = vld [vmem:[#allocation2 + $0x10] sm:$0xff]   ;;  %v1732_v16 = vld [vmem:[#allocation2 + $0xc8] sm:$0xff]  }
  0x35   :  { %1538 = vmatpush3.bf16.msra.mxu1 %v1698_v15  ;;  %v358_v53 = vrot.slane %v353_v50, %v357_v49  ;;  %v362_v54 = vrot.slane %v353_v50, %v361_v51  ;;  %v1722_v61 = vld [vmem:[#allocation2] sm:$0xff]   ;;  %v366_v4 = vrot.slane %v353_v50, %v365_v59  ;;  %v370_v5 = vrot.slane %v353_v50, %v369_v62  ;;  %v1731_v15 = vld [vmem:[#allocation2 + $0x58] sm:$0xff]   ;;  %v1753_v43 = vld [vmem:[#allocation2 + $0xb0] sm:$0xff]  }
  0x36   :  { %1539 = vmatprep.subr.bf16.mxu1 %v1700_v17  ;;  %1522 = vmatpush3.bf16.msra.mxu0 %v1701_v18  ;;  %v77_v55 = vcombine.high %v1949_v52, %v1949_v52  ;;  %v1954_v3 = vrot.slane %v62_v57, %v1940_v47  ;;  %v1730_v13 = vld [vmem:[#allocation2 + $0x80] sm:$0xff]   ;;  %v1733_v18 = vld [vmem:[#allocation2 + $0x18] sm:$0xff]   ;;  %v104_v42 = vpack.c.bf16 %v1949_v52, %v1949_v52  ;;  %v1756_v46 = vld [vmem:[#allocation2 + $0x148] sm:$0xff]  }
  0x37   :  { %1523 = vmatprep.subr.bf16.mxu0 %v1703_v20  ;;  %v1735_v20 = vld [vmem:[#allocation2 + $0x60] sm:$0xff]   ;;  %v1755_v45 = vld [vmem:[#allocation2 + $0xf8] sm:$0xff]   ;;  %v1758_v51 = vld [vmem:[#allocation2 + $0x108] sm:$0xff]  }
  0x38   :  { %v105_v63 = vpack.c.bf16 %v77_v55, %v77_v55  ;;  %v78_v9 = vcombine.high %v1954_v3, %v1954_v3  ;;  %v1754_v44 = vld [vmem:[#allocation2 + $0x100] sm:$0xff]   ;;  %v1757_v50 = vld [vmem:[#allocation2 + $0xb8] sm:$0xff]   ;;  %v1760_v52 = vld [vmem:[#allocation2 + $0x150] sm:$0xff]   ;;  %v106_v55 = vpack.c.bf16 %v1954_v3, %v1954_v3 }
  0x39   :  { %1540 = vmatpush3.bf16.msra.mxu1 %v1702_v19  ;;  %v1734_v19 = vld [vmem:[#allocation2 + $0x88] sm:$0xff]   ;;  %v1764_v57 = vld [vmem:[#allocation2 + $0x158] sm:$0xff]   ;;  %v1768_v62 = vld [vmem:[#allocation2 + $0x160] sm:$0xff]  }
  0x3a   :  { %1541 = vmatprep.subr.bf16.mxu1 %v1704_v21  ;;  %1524 = vmatpush3.bf16.msra.mxu0 %v1705_v22  ;;  %v107_v17 = vpack.c.bf16 %v78_v9, %v78_v9  ;;  %v1736_v21 = vld [vmem:[#allocation2 + $0xd0] sm:$0xff]   ;;  %v1737_v22 = vld [vmem:[#allocation2 + $0x20] sm:$0xff]   ;;  %v1773_v3 = vld [vmem:[#allocation2 + $0x1d8] sm:$0xff]  }
  0x3b   :  { %1525 = vmatprep.subr.bf16.mxu0 %v1707_v24  ;;  %v1739_v24 = vld [vmem:[#allocation2 + $0x68] sm:$0xff]   ;;  %v1779_v9 = vld [vmem:[#allocation2 + $0x1a0] sm:$0xff]  }
  0x3d   :  { %1542 = vmatpush3.bf16.msra.mxu1 %v1706_v23  ;;  %v1738_v23 = vld [vmem:[#allocation2 + $0x90] sm:$0xff]  }
  0x3e   :  { %1543 = vmatprep.subr.bf16.mxu1 %v1708_v25  ;;  %1526 = vmatpush3.bf16.msra.mxu0 %v1709_v26  ;;  %v1740_v25 = vld [vmem:[#allocation2 + $0xd8] sm:$0xff]   ;;  %v1741_v26 = vld [vmem:[#allocation2 + $0x28] sm:$0xff]  }
  0x3f   :  { %1527 = vmatprep.subr.bf16.mxu0 %v1711_v28  ;;  %v1743_v28 = vld [vmem:[#allocation2 + $0x70] sm:$0xff]  }
  0x41   :  { %1544 = vmatpush3.bf16.msra.mxu1 %v1710_v27  ;;  %v1742_v27 = vld [vmem:[#allocation2 + $0x98] sm:$0xff]  }
  0x42   :  { %1545 = vmatprep.subr.bf16.mxu1 %v1712_v29  ;;  %1528 = vmatpush3.bf16.msra.mxu0 %v1713_v30  ;;  %v1744_v29 = vld [vmem:[#allocation2 + $0xe0] sm:$0xff]   ;;  %v59_v30 = vld [vmem:[%s2009_s0 + $0x8] sm:$0xff] }
  0x43   :  { %1529 = vmatprep.subr.bf16.mxu0 %v1715_v32  ;;  %v1746_v32 = vld [vmem:[#allocation2 + $0xa0] sm:$0xff]  }
  0x45   :  { %1546 = vmatpush3.bf16.msra.mxu1 %v1714_v31  ;;  %v1745_v31 = vld [vmem:[#allocation2 + $0x30] sm:$0xff]  }
  0x46   :  { %1547 = vmatprep.subr.bf16.mxu1 %v1716_v33  ;;  %1530 = vmatpush3.bf16.msra.mxu0 %v1717_v34  ;;  %v1747_v33 = vld [vmem:[#allocation2 + $0x78] sm:$0xff]   ;;  %v1748_v34 = vld [vmem:[#allocation2 + $0xe8] sm:$0xff]  }
  0x47   :  { %1559 = vmatprep.subr.bf16.mxu0 %v1720_v37  ;;  %v1750_v37 = vld [vmem:[#allocation2 + $0xa8] sm:$0xff]  }
  0x49   :  { %1548 = vmatpush3.bf16.msra.mxu1 %v1718_v35  ;;  %v1962_v35 = vrot.slane %v59_v30, %v1940_v47 }
  0x4a   :  { %1549 = vmatprep.subr.bf16.mxu1 %v1719_v36  ;;  %v1749_v36 = vld [vmem:[#allocation2 + $0x38] sm:$0xff]  }
  0x4d   :  { %1550 = vmatpush3.bf16.msra.mxu1 %v1721_v38  ;;  %v1751_v38 = vld [vmem:[#allocation2 + $0xf0] sm:$0xff]  }
  0x4e   :  { %1551 = vmatprep.subr.bf16.mxu1 %v1723_v39  ;;  %v1752_v39 = vld [vmem:[#allocation2 + $0x140] sm:$0xff]  }
  0x51   :  { %1552 = vmatpush3.bf16.msra.mxu1 %v1725_v40  ;;  %v94_v40 = vcombine.high %v1962_v35, %v1962_v35 }
  0x52   :  { %1581 = vmatprep.subr.bf16.mxu1 %v1728_v41  ;;  %v79_v41 = vcombine.high %v59_v30, %v59_v30 }
  0x53   :  { %v109_v48 = vpack.c.bf16 %v94_v40, %v94_v40 }
  0x54   :  { %v1969_v49 = vrot.slane %v79_v41, %v1940_v47  ;;  %v1762_v47 = vld [vmem:[#allocation2 + $0x110] sm:$0xff]  }
  0xff   :  { %v305_v56 = vpop.f32.mrb[0].mxu1 }
 0x100   :  { %vm375_vm1 = vcmp.eq.f32.partialorder %v305_v56, %v358_v53  ;;  %v307_v58 = vpop.f32.mrb[1].mxu1  ;;  %v1761_v53 = vld [vmem:[#allocation2 + $0x1c0] sm:$0xff]  }
 0x101   :  { %vm376_vm2 = vcmp.eq.f32.partialorder %v307_v58, %v362_v54  ;;  %v309_v60 = vpop.f32.mrb[2].mxu1  ;;  %vm1436_vm4 = vmpackc.low %vm375_vm1, %vm375_vm1  ;;  %v95_v54 = vcombine.high %v1969_v49, %v1969_v49  ;;  %v1763_v56 = vld [vmem:[#allocation2 + $0x180] sm:$0xff]   ;;  %v1765_v58 = vld [vmem:[#allocation2 + $0x1c8] sm:$0xff]  }
 0x102   :  { %v310_v0 = vpop.f32.mrb[3].mxu1  ;;  %vm1434_vm3 = vmpackc.low %vm376_vm2, %vm376_vm2  ;;  %v1766_v60 = vld [vmem:[#allocation2 + $0x118] sm:$0xff]  }
 0x103   :  { %1435 = vmatprep.mubr.msk.bf16.mxu0 %vm1434_vm3, %v1851_v2  ;;  %v111_v59 = vpack.c.bf16 %v95_v54, %v95_v54  ;;  %v1770_v0 = vld [vmem:[#allocation2 + $0x120] sm:$0xff]  }
 0x104   :  { %1437 = vmatmul.mubr.msk.bf16.vlgmr.msra.gmra.mrb[0].mxu0 %vm1436_vm4, %v1851_v2 }
 0x105   :  { %1560 = vmatpush3.bf16.msra.mxu0 %v1722_v61  ;;  %1143 = vmatprep.mubr.bf16.mxu0 %v105_v63  ;;  %v1767_v61 = vld [vmem:[#allocation2 + $0x188] sm:$0xff]   ;;  %v1769_v63 = vld [vmem:[#allocation2 + $0x1d0] sm:$0xff]  }
 0x106   :  { %1561 = vmatprep.subr.bf16.mxu0 %v1724_v1  ;;  %v1771_v1 = vld [vmem:[#allocation2 + $0x190] sm:$0xff]  }
 0x107   :  { %v346_v8 = vpop.f32.mrb[4].mxu1 }
 0x108   :  { %vm377_vm5 = vcmp.eq.f32.partialorder %v346_v8, %v366_v4  ;;  %v348_v10 = vpop.f32.mrb[5].mxu1  ;;  %v1774_v4 = vld [vmem:[#allocation2 + $0x128] sm:$0xff]   ;;  %v1778_v8 = vld [vmem:[#allocation2 + $0x130] sm:$0xff]  }
 0x109   :  { %vm378_vm6 = vcmp.eq.f32.partialorder %v348_v10, %v370_v5  ;;  %1562 = vmatpush3.bf16.msra.mxu0 %v1726_v6  ;;  %v350_v11 = vpop.f32.mrb[6].mxu1  ;;  %vm1440_vm8 = vmpackc.low %vm377_vm5, %vm377_vm5  ;;  %v1775_v5 = vld [vmem:[#allocation2 + $0x198] sm:$0xff]   ;;  %v1776_v6 = vld [vmem:[#allocation2 + $0x170] sm:$0xff]  }
 0x10a   :  { %vm1438_vm7 = vmpackc.low %vm378_vm6, %vm378_vm6  ;;  %v351_v14 = vpop.f32.mrb[7].mxu1  ;;  %1563 = vmatprep.subr.bf16.mxu0 %v1727_v7  ;;  %v1777_v7 = vld [vmem:[#allocation2 + $0x1e0] sm:$0xff]   ;;  %v1780_v10 = vld [vmem:[#allocation2 + $0x178] sm:$0xff]  }
 0x10b   :  { %1439 = vmatprep.mubr.msk.bf16.mxu1 %vm1438_vm7, %v1851_v2  ;;  %v1781_v11 = vld [vmem:[#allocation2 + $0x1e8] sm:$0xff]   ;;  %v1784_v14 = vld [vmem:[#allocation2 + $0x1f0] sm:$0xff]  }
 0x10c   :  { %1441 = vmatmul.mubr.msk.bf16.vlgmr.msra.gmra.mrb[8].mxu1 %vm1440_vm8, %v1851_v2  ;;  %v1772_v2 = vld [vmem:[#allocation2 + $0x168] sm:$0xff]  }
 0x10d   :  { %1564 = vmatpush3.bf16.msra.mxu0 %v1729_v12  ;;  %1582 = vmatpush3.bf16.msra.mxu1 %v1730_v13  ;;  %v1782_v12 = vld [vmem:[#allocation2 + $0x138] sm:$0xff]   ;;  %v1783_v13 = vld [vmem:[#allocation2 + $0x1a8] sm:$0xff]  }
 0x10e   :  { %1565 = vmatprep.subr.bf16.mxu0 %v1731_v15  ;;  %1583 = vmatprep.subr.bf16.mxu1 %v1732_v16  ;;  %v108_v15 = vpack.c.bf16 %v1962_v35, %v1962_v35  ;;  %v1785_v16 = vld [vmem:[#allocation2 + $0x1b0] sm:$0xff]  }
 0x10f   :  { %1183 = vmatprep.mubr.bf16.mxu1 %v107_v17  ;;  %v1786_v17 = vld [vmem:[#allocation2 + $0x1f8] sm:$0xff]  }
 0x111   :  { %1566 = vmatpush3.bf16.msra.mxu0 %v1733_v18  ;;  %1584 = vmatpush3.bf16.msra.mxu1 %v1734_v19  ;;  %v1787_v18 = vld [vmem:[#allocation2 + $0x1b8] sm:$0xff]   ;;  %v110_v19 = vpack.c.bf16 %v1969_v49, %v1969_v49 }
 0x112   :  { %1567 = vmatprep.subr.bf16.mxu0 %v1735_v20  ;;  %1585 = vmatprep.subr.bf16.mxu1 %v1736_v21  ;;  %v1789_v20 = vld [vmem:[%s2016_s7] sm:$0xff]   ;;  %v1852_v21 = vmov 0.0  }
 0x115   :  { %1568 = vmatpush3.bf16.msra.mxu0 %v1737_v22  ;;  %1586 = vmatpush3.bf16.msra.mxu1 %v1738_v23  ;;  %v1790_v22 = vld [vmem:[%s2016_s7 + $0x8] sm:$0xff]   ;;  %v1791_v23 = vld [vmem:[%s2016_s7 + $0x10] sm:$0xff]  }
 0x116   :  { %1569 = vmatprep.subr.bf16.mxu0 %v1739_v24  ;;  %1587 = vmatprep.subr.bf16.mxu1 %v1740_v25  ;;  %v1792_v24 = vld [vmem:[%s2016_s7 + $0x18] sm:$0xff]   ;;  %v1793_v25 = vld [vmem:[%s2016_s7 + $0x20] sm:$0xff]  }
 0x119   :  { %1570 = vmatpush3.bf16.msra.mxu0 %v1741_v26  ;;  %1588 = vmatpush3.bf16.msra.mxu1 %v1742_v27  ;;  %v1794_v26 = vld [vmem:[%s2016_s7 + $0x28] sm:$0xff]   ;;  %v1795_v27 = vld [vmem:[%s2016_s7 + $0x30] sm:$0xff]  }
 0x11a   :  { %1571 = vmatprep.subr.bf16.mxu0 %v1743_v28  ;;  %1589 = vmatprep.subr.bf16.mxu1 %v1744_v29  ;;  %v1796_v28 = vld [vmem:[%s2016_s7 + $0x38] sm:$0xff]  }
 0x11d   :  { %1572 = vmatpush3.bf16.msra.mxu0 %v1745_v31  ;;  %1590 = vmatpush3.bf16.msra.mxu1 %v1746_v32 }
 0x11e   :  { %1573 = vmatprep.subr.bf16.mxu0 %v1747_v33  ;;  %1591 = vmatprep.subr.bf16.mxu1 %v1748_v34 }
 0x121   :  { %1574 = vmatpush3.bf16.msra.mxu0 %v1749_v36  ;;  %1592 = vmatpush3.bf16.msra.mxu1 %v1750_v37 }
 0x122   :  { %1593 = vmatprep.subr.bf16.mxu1 %v1751_v38  ;;  %1603 = vmatprep.subr.bf16.mxu0 %v1752_v39 }
 0x124   :  { %1144 = vmatmul.mubr.bf16.vlgmr.msra.gmra.mrb[4].mxu0 %v104_v42 }
 0x125   :  { %1594 = vmatpush3.bf16.msra.mxu1 %v1753_v43  ;;  %1604 = vmatpush3.bf16.msra.mxu0 %v1754_v44 }
 0x126   :  { %1595 = vmatprep.subr.bf16.mxu1 %v1755_v45  ;;  %1605 = vmatprep.subr.bf16.mxu0 %v1756_v46 }
 0x127   :  { %1223 = vmatprep.mubr.bf16.mxu0 %v109_v48 }
 0x129   :  { %1596 = vmatpush3.bf16.msra.mxu1 %v1757_v50  ;;  %1606 = vmatpush3.bf16.msra.mxu0 %v1758_v51 }
 0x12a   :  { %1607 = vmatprep.subr.bf16.mxu0 %v1760_v52  ;;  %1625 = vmatprep.subr.bf16.mxu1 %v1761_v53 }
 0x12c   :  { %1184 = vmatmul.mubr.bf16.vlgmr.msra.gmra.mrb[12].mxu1 %v106_v55 }
 0x12d   :  { %1608 = vmatpush3.bf16.msra.mxu0 %v1762_v47  ;;  %1626 = vmatpush3.bf16.msra.mxu1 %v1763_v56 }
 0x12e   :  { %1609 = vmatprep.subr.bf16.mxu0 %v1764_v57  ;;  %1627 = vmatprep.subr.bf16.mxu1 %v1765_v58 }
 0x12f   :  { %1263 = vmatprep.mubr.bf16.mxu1 %v111_v59 }
 0x131   :  { %1610 = vmatpush3.bf16.msra.mxu0 %v1766_v60  ;;  %1628 = vmatpush3.bf16.msra.mxu1 %v1767_v61 }
 0x132   :  { %1611 = vmatprep.subr.bf16.mxu0 %v1768_v62  ;;  %1629 = vmatprep.subr.bf16.mxu1 %v1769_v63  ;;  %v1506_v62 = vld [vmem:[%s2015_s6] ss:$0 sm:$0xff] }
 0x135   :  { %1612 = vmatpush3.bf16.msra.mxu0 %v1770_v0  ;;  %1630 = vmatpush3.bf16.msra.mxu1 %v1771_v1 }
 0x136   :  { %1613 = vmatprep.subr.bf16.mxu0 %v1772_v2  ;;  %1631 = vmatprep.subr.bf16.mxu1 %v1773_v3 }
 0x139   :  { %1614 = vmatpush3.bf16.msra.mxu0 %v1774_v4  ;;  %1632 = vmatpush3.bf16.msra.mxu1 %v1775_v5 }
 0x13a   :  { %1615 = vmatprep.subr.bf16.mxu0 %v1776_v6  ;;  %1633 = vmatprep.subr.bf16.mxu1 %v1777_v7 }
 0x13d   :  { %1616 = vmatpush3.bf16.msra.mxu0 %v1778_v8  ;;  %1634 = vmatpush3.bf16.msra.mxu1 %v1779_v9 }
 0x13e   :  { %1617 = vmatprep.subr.bf16.mxu0 %v1780_v10  ;;  %1635 = vmatprep.subr.bf16.mxu1 %v1781_v11 }
 0x141   :  { %1618 = vmatpush3.bf16.msra.mxu0 %v1782_v12  ;;  %1636 = vmatpush3.bf16.msra.mxu1 %v1783_v13 }
 0x142   :  { %1637 = vmatprep.subr.bf16.mxu1 %v1784_v14  ;;  %1656 = vmatprep.subr.bf16.mxu0 %v1852_v21 }
 0x144   :  { %1224 = vmatmul.mubr.bf16.vlgmr.msra.gmra.mrb[8].mxu0 %v108_v15 }
 0x145   :  { %1638 = vmatpush3.bf16.msra.mxu1 %v1785_v16  ;;  %1657 = vmatpush3.bf16.msra.mxu0 %v1789_v20 }
 0x146   :  { %1639 = vmatprep.subr.bf16.mxu1 %v1786_v17  ;;  %1658 = vmatprep.subr.bf16.mxu0 %v1852_v21 }
 0x147   :  { %1672 = vmatprep.mubr.msk.bf16.mxu0 %vm1853_vm9, %v1852_v21 }
 0x149   :  { %1640 = vmatpush3.bf16.msra.mxu1 %v1787_v18  ;;  %1659 = vmatpush3.bf16.msra.mxu0 %v1790_v22 }
 0x14a   :  { %1660 = vmatprep.subr.bf16.mxu0 %v1852_v21 }
 0x14c   :  { %1264 = vmatmul.mubr.bf16.vlgmr.msra.gmra.mrb[16].mxu1 %v110_v19 }
 0x14d   :  { %1661 = vmatpush3.bf16.msra.mxu0 %v1791_v23 }
 0x14e   :  { %1662 = vmatprep.subr.bf16.mxu0 %v1852_v21 }
 0x151   :  { %1663 = vmatpush3.bf16.msra.mxu0 %v1792_v24 }
 0x152   :  { %1664 = vmatprep.subr.bf16.mxu0 %v1852_v21 }
 0x155   :  { %1665 = vmatpush3.bf16.msra.mxu0 %v1793_v25 }
 0x156   :  { %1666 = vmatprep.subr.bf16.mxu0 %v1852_v21 }
 0x159   :  { %1667 = vmatpush3.bf16.msra.mxu0 %v1794_v26 }
 0x15a   :  { %1668 = vmatprep.subr.bf16.mxu0 %v1852_v21 }
 0x15d   :  { %1669 = vmatpush3.bf16.msra.mxu0 %v1795_v27 }
 0x15e   :  { %1670 = vmatprep.subr.bf16.mxu0 %v1852_v21 }
 0x161   :  { %1671 = vmatpush3.bf16.msra.mxu0 %v1796_v28 }
 0x1d7   :  { %v1531_v29 = vpop.f32.mrb[0].mxu0 }
 0x1d8   :  { %v1532_v30 = vpop.f32.mrb[1].mxu0 }
 0x1d9   :  { %v1533_v31 = vadd.f32 %v1532_v30, %v1531_v29  ;;  %v1534_v32 = vpop.f32.mrb[2].mxu0 }
 0x1da   :  { %v1535_v33 = vpop.f32.mrb[3].mxu0 }
 0x1df   :  { %v1553_v34 = vpop.f32.mrb[8].mxu1 }
 0x1e0   :  { %v1554_v35 = vpop.f32.mrb[9].mxu1 }
 0x1e1   :  { %v1555_v36 = vadd.f32 %v1554_v35, %v1553_v34  ;;  %v1556_v37 = vpop.f32.mrb[10].mxu1 }
 0x1e2   :  { %v1557_v38 = vpop.f32.mrb[11].mxu1 }
 0x1e3   :  { %v722_v39 = vadd.f32 %v1555_v36, %v1533_v31 }
 0x1f7   :  { %v1575_v40 = vpop.f32.mrb[4].mxu0 }
 0x1f8   :  { %v1576_v41 = vpop.f32.mrb[5].mxu0 }
 0x1f9   :  { %v1577_v42 = vadd.f32 %v1576_v41, %v1575_v40  ;;  %v1578_v43 = vpop.f32.mrb[6].mxu0 }
 0x1fa   :  { %v1579_v44 = vpop.f32.mrb[7].mxu0 }
 0x1fb   :  { %v1146_v45 = vadd.f32 %v1577_v42, %v722_v39 }
 0x1ff   :  { %v1597_v46 = vpop.f32.mrb[12].mxu1 }
 0x200   :  { %v1598_v48 = vpop.f32.mrb[13].mxu1 }
 0x201   :  { %v1599_v49 = vadd.f32 %v1598_v48, %v1597_v46  ;;  %v1600_v50 = vpop.f32.mrb[14].mxu1 }
 0x202   :  { %v1601_v51 = vpop.f32.mrb[15].mxu1 }
 0x203   :  { %v1186_v52 = vadd.f32 %v1599_v49, %v1146_v45 }
 0x217   :  { %v1619_v53 = vpop.f32.mrb[8].mxu0 }
 0x218   :  { %v1620_v54 = vpop.f32.mrb[9].mxu0 }
 0x219   :  { %v1621_v55 = vadd.f32 %v1620_v54, %v1619_v53  ;;  %v1622_v47 = vpop.f32.mrb[10].mxu0 }
 0x21a   :  { %v1623_v56 = vpop.f32.mrb[11].mxu0 }
 0x21b   :  { %v1226_v57 = vadd.f32 %v1621_v55, %v1186_v52 }
 0x21f   :  { %v1641_v58 = vpop.f32.mrb[16].mxu1 }
 0x220   :  { %v1642_v59 = vpop.f32.mrb[17].mxu1 }
 0x221   :  { %v1643_v60 = vadd.f32 %v1642_v59, %v1641_v58  ;;  %v1644_v61 = vpop.f32.mrb[18].mxu1 }
 0x222   :  { %v1645_v63 = vpop.f32.mrb[19].mxu1 }
 0x223   :  { %v1266_v0 = vadd.f32 %v1643_v60, %v1226_v57 }
 0x225   :  { %v1278_v1 = vadd.f32 %v1506_v62, %v1266_v0 }
 0x227   :  { %v1279_v2 = vmax.f32 %v1278_v1, 0.0 }
 0x229   :  { %v1280_v3 = vpack.c.bf16 %v1279_v2, %v1279_v2 }
 0x22b   :  { %1673 = vmatmul.mubr.bf16.vlgmr.msra.gmra.mrb[12].mxu0 %v1280_v3 }
 0x2fe   :  { %v1379_v4 = vpop.f32.mrb[12].mxu0 }
 0x2ff   :  { %1385 = vst [vmem:[%s2017_s8] sm:$0x3] %v1379_v4  ;;  %v1674_v5 = vpop.f32.mrb[13].mxu0 }
 0x300   :  { %v1382_v6 = vpop.f32.mrb[14].mxu0 }
 0x301   :  { %v1675_v7 = vpop.f32.mrb[15].mxu0 }
 0x302   :  { %1390 = vsyncpa [#allocation3], 1 }
 0x303   :  { %1391 = vsyncpa [#allocation5], 1 }

</bundles_post_ra>
